<compile_context>
chip_gen: v7x
topology: tpu7x:2x2x1
jax: 0.10.0
libtpu: 0.0.40
codegen_flags: <defaults>
</compile_context>

<pallas_src>
import jax
import jax.numpy as jnp
from jax.experimental import pallas as pl
from jax.experimental.pallas import tpu as pltpu


def _sine_activation_kernel(tau_ref, p_ref, o_ref):
    # tau_ref: (TM, R)      packed time values; lane g holds row-group g
    # p_ref  : (R+2, R*F)   rows 0..R-1: block-diagonal weights
    #                       row  R     : tiled biases
    #                       row  R+1   : tiled sin/linear mask (1.0 -> sin)
    # o_ref  : (TM, R*F)    lane-dense output slab
    r = tau_ref.shape[1]

    ew = p_ref[0:r, :]                        # (R, R*F) block-diag weights
    bias = p_ref[r:r + 1, :]                  # (1, R*F) tiled biases
    sin_mask = p_ref[r + 1:r + 2, :] != 0.0   # (1, R*F) select row

    # Expansion + affine as one small matmul on the otherwise-idle MXU:
    # lin[m, g*F + c] = tau[m, g] * w_all[c] + b_all[c]
    lin = jnp.dot(tau_ref[...], ew,
                  preferred_element_type=jnp.float32,
                  precision=jax.lax.Precision.HIGHEST) + bias

    # sin() on the first F-1 columns of every F-wide group; last column linear.
    o_ref[...] = jnp.where(sin_mask, jnp.sin(lin), lin).astype(o_ref.dtype)


def sine_activation(tau, w, b, w0, b0, *, tile_m=4096, unpack=True):
    """Pallas implementation of SineActivation.forward (in_features must be 1).

    tau: any shape; flattened to (-1, 1) like the PyTorch module.
    w:  (1, out_features - 1), b: (out_features - 1,)
    w0: (1, 1),                b0: (1,)
    returns: (N, out_features) float32, or the lane-packed (rows, 128) slab
             when unpack=False (avoids the post-kernel relayout copy).
    """
    tau_flat = tau.reshape(-1).astype(jnp.float32)         # (N,)
    n = int(tau_flat.shape[0])
    f = int(w.shape[1]) + 1                                 # out_features

    # Fused parameters: [w | w0] and [b | b0]; the linear branch is the last
    # column of each F-wide lane group.
    w_all = jnp.concatenate([w.astype(jnp.float32).reshape(-1),
                             w0.astype(jnp.float32).reshape(-1)])   # (F,)
    b_all = jnp.concatenate([b.astype(jnp.float32).reshape(-1),
                             b0.astype(jnp.float32).reshape(-1)])   # (F,)

    # Lane packing: R row-groups of F lanes each fill a 128-lane slab.
    lane = 128
    r_pack = lane // f if (0 < f <= lane and lane % f == 0) else 1
    fr = r_pack * f
    # NOTE: if 128 % F != 0 this degrades to narrow (masked) stores — a perf
    # cliff only, not a correctness issue.

    # Host-precomputed (R+2, R*F) parameter slab:
    #   rows 0..R-1 : block-diagonal weights (row g holds w_all in its block)
    #   row  R      : biases tiled R times
    #   row  R+1    : sin-vs-linear mask tiled R times (1.0 where sin applies)
    ew = jnp.kron(jnp.eye(r_pack, dtype=jnp.float32), w_all.reshape(1, f))
    b_tiled = jnp.tile(b_all, r_pack).reshape(1, fr)
    mask_one = jnp.concatenate([jnp.ones((f - 1,), jnp.float32),
                                jnp.zeros((1,), jnp.float32)])
    mask_tiled = jnp.tile(mask_one, r_pack).reshape(1, fr)
    params = jnp.concatenate([ew, b_tiled, mask_tiled], axis=0)     # (R+2, R*F)

    # Grid / tile selection.
    n_groups = (n + r_pack - 1) // r_pack                   # packed rows
    if n_groups <= 8:
        # Tiny problem: single step, block == whole array (no (8,128) rule).
        tm = max(n_groups, 1)
        grid_rows = 1
    else:
        # At least 2 grid steps (lets v7x's two TensorCores split the axis),
        # otherwise as big as tile_m allows.  VMEM per stage:
        # 2*(tm,128-padded input) + 2*(tm,128 output) f32 = tm * 2 KiB.
        half = -(-n_groups // 2)
        tm = min(max(8, (int(tile_m) // 8) * 8), ((half + 7) // 8) * 8)
        grid_rows = -(-n_groups // tm)

    n_rows_pad = grid_rows * tm
    n_pad = n_rows_pad * r_pack
    if n_pad != n:
        tau_flat = jnp.pad(tau_flat, (0, n_pad - n))
    tau_packed = tau_flat.reshape(n_rows_pad, r_pack)        # (rows, R)

    out_packed = pl.pallas_call(
        _sine_activation_kernel,
        out_shape=jax.ShapeDtypeStruct((n_rows_pad, fr), jnp.float32),
        grid_spec=pltpu.PrefetchScalarGridSpec(
            num_scalar_prefetch=0,
            grid=(grid_rows,),
            in_specs=[
                pl.BlockSpec((tm, r_pack), lambda i: (i, 0)),
                pl.BlockSpec((r_pack + 2, fr), lambda i: (0, 0)),
            ],
            out_specs=pl.BlockSpec((tm, fr), lambda i: (i, 0)),
        ),
        compiler_params=pltpu.CompilerParams(
            dimension_semantics=("parallel",),
            vmem_limit_bytes=32 * 1024 * 1024),
    )(tau_packed, params)

    if not unpack:
        # Lane-packed slab: row m, lanes [g*F, (g+1)*F) == output row m*R + g.
        return out_packed

    # Row-major unpack back to (N, F).  This changes the minor dim (128 -> F)
    # and therefore costs one relayout pass in XLA; prefer unpack=False when
    # the consumer can take the packed slab.
    out = out_packed.reshape(n_pad, f)
    if n_pad != n:
        out = out[:n]
    return out


if __name__ == "__main__":
    # Module config: in_features must be 1 for the PyTorch forward to
    # typecheck (tau is reshaped to (-1, 1) before the matmul).
    in_features = 1
    out_features = 32

    key = jax.random.PRNGKey(0)
    k_tau, k_w0, k_b0, k_w, k_b = jax.random.split(key, 5)

    # Deterministic parameter init (analogue of torch.randn).
    w0 = jax.random.normal(k_w0, (in_features, 1), dtype=jnp.float32)
    b0 = jax.random.normal(k_b0, (1,), dtype=jnp.float32)
    w = jax.random.normal(k_w, (in_features, out_features - 1), dtype=jnp.float32)
    b = jax.random.normal(k_b, (out_features - 1,), dtype=jnp.float32)

    # Example input: a (batch=8, seq=16) block of time values -> N = 128 rows.
    tau = jax.random.normal(k_tau, (8, 16), dtype=jnp.float32)

    out = sine_activation(tau, w, b, w0, b0)
    out = jax.block_until_ready(out)

    # Pure-JAX reference of the PyTorch forward semantics.
    tau_col = tau.reshape((-1, 1))
    v1 = jnp.sin(jnp.matmul(tau_col, w, precision=jax.lax.Precision.HIGHEST) + b)
    v2 = jnp.matmul(tau_col, w0, precision=jax.lax.Precision.HIGHEST) + b0
    ref = jnp.concatenate([v1, v2], axis=1)

    assert out.shape == (tau_col.shape[0], out_features), out.shape
    err = float(jnp.max(jnp.abs(out - ref)))
    assert jnp.allclose(out, ref, atol=1e-4, rtol=1e-4), err
    print("KERNEL_OK")
</pallas_src>

<mosaic_0001>
module attributes {stable_mosaic.version = 11 : i64} {
  func.func @_sine_activation_kernel(%arg0: i32, %arg1: memref<16x4xf32, #tpu.memory_space<vmem>>, %arg2: memref<6x128xf32, #tpu.memory_space<vmem>>, %arg3: memref<16x128xf32, #tpu.memory_space<vmem>>) attributes {dimension_semantics = [#tpu.dimension_semantics<parallel>], iteration_bounds = array<i64: 2>, scalar_prefetch = 0 : i64, scratch_operands = 0 : i64, tpu.core_type = #tpu.core_type<tc>, window_params = [{transform_indices = @transform_0, window_bounds = array<i64: 16, 4>}, {pipeline_mode = #tpu.pipeline_mode<synchronous>, transform_indices = @transform_1, window_bounds = array<i64: 6, 128>}, {transform_indices = @transform_2, window_bounds = array<i64: 16, 128>}]} {
    %c0 = arith.constant 0 : index
    %c0_0 = arith.constant 0 : index
    %0 = vector.load %arg2[%c0, %c0_0] : memref<6x128xf32, #tpu.memory_space<vmem>>, vector<4x128xf32>
    %c4 = arith.constant 4 : index
    %c0_1 = arith.constant 0 : index
    %1 = vector.load %arg2[%c4, %c0_1] : memref<6x128xf32, #tpu.memory_space<vmem>>, vector<1x128xf32>
    %c5 = arith.constant 5 : index
    %c0_2 = arith.constant 0 : index
    %2 = vector.load %arg2[%c5, %c0_2] : memref<6x128xf32, #tpu.memory_space<vmem>>, vector<1x128xf32>
    %cst = arith.constant 0.000000e+00 : f32
    %3 = vector.broadcast %cst : f32 to vector<1x128xf32>
    %4 = arith.cmpf one, %2, %3 : vector<1x128xf32>
    %c0_3 = arith.constant 0 : index
    %c0_4 = arith.constant 0 : index
    %5 = vector.load %arg1[%c0_3, %c0_4] : memref<16x4xf32, #tpu.memory_space<vmem>>, vector<16x4xf32>
    %cst_5 = arith.constant dense<0.000000e+00> : vector<16x128xf32>
    %6 = tpu.matmul %5, %0, %cst_5 {dimension_numbers = #tpu.dot_dimension_numbers<[1], [0], [0], [1], [0, 0, 1, 1], [], []>, precision = #tpu.contract_precision<fp32>} : vector<16x4xf32>, vector<4x128xf32>, vector<16x128xf32> -> vector<16x128xf32>
    %7 = vector.broadcast %1 : vector<1x128xf32> to vector<16x128xf32>
    %8 = arith.addf %6, %7 : vector<16x128xf32>
    %9 = math.sin %8 : vector<16x128xf32>
    %10 = vector.shape_cast %4 : vector<1x128xi1> to vector<1x128xi1>
    %11 = vector.broadcast %10 : vector<1x128xi1> to vector<16x128xi1>
    %12 = arith.select %11, %9, %8 : vector<16x128xi1>, vector<16x128xf32>
    %c0_6 = arith.constant 0 : index
    %c0_7 = arith.constant 0 : index
    %13 = vector.load %arg3[%c0_6, %c0_7] : memref<16x128xf32, #tpu.memory_space<vmem>>, vector<16x128xf32>
    tpu.vector_store %arg3[%c0_6, %c0_7], %12 {strides = array<i32>} : memref<16x128xf32, #tpu.memory_space<vmem>>, vector<16x128xf32>,
    return
  }
  func.func @transform_0(%arg0: i32) -> (i32, i32) {
    %c0_i32 = arith.constant 0 : i32
    %c0_i32_0 = arith.constant 0 : i32
    return %arg0, %c0_i32 : i32, i32
  }
  func.func @transform_1(%arg0: i32) -> (i32, i32) {
    %c0_i32 = arith.constant 0 : i32
    %c0_i32_0 = arith.constant 0 : i32
    %c0_i32_1 = arith.constant 0 : i32
    return %c0_i32, %c0_i32_0 : i32, i32
  }
  func.func @transform_2(%arg0: i32) -> (i32, i32) {
    %c0_i32 = arith.constant 0 : i32
    %c0_i32_0 = arith.constant 0 : i32
    return %arg0, %c0_i32 : i32, i32
  }
}

</mosaic_0001>

<bundles_post_ra>
// kernel: tpu_custom_call.1
= control target key start
LH: loop header
LB: loop body
LE: loop exit
PB: predicated region body
PF: predicated region fallthrough
CT: control target
= control target key end

     0   :  { %7 = vsyncpa [#allocation3], 0  ;;  %s1381_s0 = inlined_call_operand.vmem [shape: f32[32,4], index: 0, kind: input, shape index: {}]   ;;  %s1382_s1 = inlined_call_operand.vmem [shape: f32[6,128], index: 1, kind: input, shape index: {}]   ;;  %s1383_s2 = inlined_call_operand.hbm [shape: f32[32,128], index: 2, kind: output, shape index: {}]  }
   0x1   :  { %9 = vsyncpa [#allocation3 + $0x1], 0  ;;  %s1184_s9 = smov 0   ;;  %s1186_s10 = smov 0  }
   0x2   :  { %s1188_s11 = smov 0   ;;  %s1190_s12 = smov 0  }
   0x3 LB: > { %s1205_s13 = sadd.s32 4294967295, %s1157_s12   ;;  %s949_s14 = sadd.s32 4294967294, %s1157_s12   ;;  %s1157_s12 = sphi %s1190_s12, %s1393_s12   ;;  %s1153_s11 = sphi %s1188_s11, %s1392_s11   ;;  %s1149_s10 = sphi %s1186_s10, %s1391_s10   ;;  %s1145_s9 = sphi %s1184_s9, %s1390_s9  }
   0x4   : > { %s1209_s15 = sadd.s32 1, %s1157_s12   ;;  %s69_s16 = sadd.s32 1, %s1153_s11 }
   0x5   : > { %s66_s17 = ssub.s32 %s1157_s12, %s1209_s15  ;;  %p79_p0 = scmp.ne.s32.totalorder %s1153_s11, %s1149_s10 }
   0x6   : > { %p67_p1 = scmp.eq.s32.totalorder %s66_s17, 0  ;;  %p80_p2 = scmp.eq.s32.totalorder %s1205_s13, 1 }
   0x7   : > { %p85_p3 = scmp.ne.s32.totalorder %s1149_s10, %s1145_s9  ;;  %p86_p4 = scmp.eq.s32.totalorder %s949_s14, 1 }
   0x8   : > { %s1220_s18 = scalar_select %p67_p1, %s1153_s11, %s69_s16  }
   0x9   : > { %p1222_p5 = por %p80_p2, %p79_p0  ;;  %p1226_p6 = por %p86_p4, %p85_p3 }
   0xa   : > { %p952_p7 = scmp.ge.s32.totalorder %s1157_s12, 1  ;;  %p116_p8 = scmp.lt.s32.totalorder %s1157_s12, 3 }
   0xc   : > { %p117_p9 = pnand %p952_p7, %p116_p8 }
   0xd   : > { %v145_v0 = vld [vmem:[%s1382_s1] sm:$0xf] (!%p117_p9)  ;;  %vm162_vm0 = vcmask (!%p117_p9), 1043456   ;;  %s954_s23 = sshll.u32 (!%p117_p9), %s1205_s13, 1  ;;  %vm155_vm1 = vcmask (!%p117_p9), 31744   ;;  %s135_s4 = sand.u32 (!%p117_p9), 1, %s1149_s10  }
   0xe   : > { %120 = sbr.rel (%p117_p9) target bundleno = 374 (0x176), region = 28  ;;  %v164_v1 = vsel (!%p117_p9), %vm162_vm0, %v145_v0, 0  ;;  %p139_p10 = scmp.lt.s32.totalorder (!%p117_p9), %s954_s23, 3  ;;  %v956_v23 = vld [vmem:[%s1382_s1 + $0x4] ss:$0 sm:$0xff] (!%p117_p9) }
   0xf   : > { %v167_v2 = vand.u32 (!%p117_p9), 4294901760, %v164_v1  ;;  %v1159_v50 = vmov (!%p117_p9), 683565275   ;;  %v1160_v54 = vmov (!%p117_p9), 2475754826   ;;  %s953_s5 = sshll.u32 (!%p117_p9), %s135_s4, 4 }
  0x10   : > { %v1161_v56 = vmov (!%p117_p9), 2131351028   ;;  %v1162_v58 = vmov (!%p117_p9), 2102212464   ;;  %v1163_v60 = vmov (!%p117_p9), 920167782  }
  0x11   : > { %1004 = vmatprep.subr.mxu0 (!%p117_p9), %v167_v2  ;;  %989 = vmatprep.subr.mxu1 (!%p117_p9), %v167_v2  ;;  %v254_v3 = vsub.f32 (!%p117_p9), %v164_v1, %v167_v2  ;;  %s137_s6 = scalar_lea.vmem (!%p117_p9), [#allocation2], %s953_s5  ;;  %s970_s7 = sshll.u32 (!%p117_p9), %s1205_s13, 8 }
  0x12   : > { %1005 = vmatpush3.msra.mxu0 (!%p117_p9), %v167_v2  ;;  %990 = vmatpush3.msra.mxu1 (!%p117_p9), %v167_v2  ;;  %s887_s8 = sshll.u32 (!%p117_p9), %s137_s6, 4  ;;  %s1332_s17 = scalar_lea.hbm (!%p117_p9), %s1383_s2, %s970_s7  ;;  %s1334_s8 = int_to_ptr.vmem [resolvable:$true] %s887_s8 }
  0x13   : > { %v255_v4 = vand.u32 (!%p117_p9), 4294901760, %v254_v3  ;;  %s1340_s13 = scalar_lea.sflag (!%p117_p9), [#allocation3], %s135_s4  ;;  %s1095_s21 = scalar_lea.vmem (!%p117_p9), %s1334_s8, 256 }
  0x14   : > { %p1096_p11 = scmp.ne.s32.totalorder (!%p117_p9), %s1334_s8, %s1095_s21  ;;  %s1166_s22 = smov (!%p117_p9), [#allocation2]  }
  0x15   : > { %s1395_s23 = smov (!%p139_p10, %s954_s23), 3  ;;  %v256_v9 = vsub.f32 %v254_v3, %v255_v4  ;;  %1009 = vmatprep.subr.mxu0 %v255_v4 }
  0x16   : > { %s955_s24 = sshll.u32 %s1395_s23, 3  ;;  %p1097_p12 = pnand %p1096_p11, %p1222_p5 }
  0x17   : > { %s142_s27 = scalar_lea.vmem %s1381_s0, %s955_s24  ;;  %v257_v12 = vand.u32 4294901760, %v256_v9  ;;  %s1099_s23 = sshll.u32 %s1166_s22, 4  ;;  %s1100_s23 = int_to_ptr.vmem [resolvable:$false] %s1099_s23 }
  0x18   : > { %v149_v5 = vld [vmem:[%s142_s27] sm:$0xff]  ;;  %v150_v6 = vld [vmem:[%s142_s27 + $0x8] sm:$0xff]  ;;  %p1098_p13 = pneg %p1097_p12  ;;  %s1101_s24 = scalar_lea.vmem %s1100_s23, 512 }
  0x19   : > { %v157_v7 = vsel %vm155_vm1, %v149_v5, 0  ;;  %v160_v8 = vsel %vm155_vm1, %v150_v6, 0  ;;  %994 = vmatprep.subr.mxu1 %v257_v12  ;;  %p1102_p0 = scmp.lt.s32.totalorder %s1334_s8, %s1100_s23  ;;  %p1103_p1 = scmp.lt.s32.totalorder %s1101_s24, %s1095_s21 }
  0x1a   : > { %v232_v10 = vand.u32 4294901760, %v157_v7  ;;  %v242_v11 = vand.u32 4294901760, %v160_v8 }
  0x1b   : > { %p1104_p2 = por %p1103_p1, %p1102_p0 }
  0x1c   : > { %v233_v13 = vsub.f32 %v157_v7, %v232_v10  ;;  %v243_v14 = vsub.f32 %v160_v8, %v242_v11 }
  0x1d   : > { %p1105_p3 = pnand %p1104_p2, %p1098_p13 }
  0x1e   : > { %v234_v15 = vand.u32 4294901760, %v233_v13  ;;  %v244_v16 = vand.u32 4294901760, %v243_v14 }
  0x20   : > { %1006 = vmatprep.mubr.f32.mxu0 %v234_v15  ;;  %v235_v17 = vsub.f32 %v233_v13, %v234_v15  ;;  %v245_v18 = vsub.f32 %v243_v14, %v244_v16 }
  0x21   : > { %1007 = vmatmul.mubr.f32.vlgmr.msra.gmra.mrb[0].mxu0 %v244_v16 }
  0x22   : > { %v236_v19 = vand.u32 4294901760, %v235_v17  ;;  %v246_v20 = vand.u32 4294901760, %v245_v18  ;;  %1010 = vmatpush3.msra.mxu0 %v255_v4  ;;  %1011 = vmatprep.mubr.f32.mxu0 %v232_v10 }
  0x23   : > { %1014 = vmatprep.subr.mxu0 %v167_v2 }
  0x24   : > { %991 = vmatprep.mubr.f32.mxu1 %v236_v19 }
  0x25   : > { %992 = vmatmul.mubr.f32.vlgmr.msra.gmra.mrb[0].mxu1 %v246_v20 }
  0x26   : > { %995 = vmatpush3.msra.mxu1 %v257_v12  ;;  %996 = vmatprep.mubr.f32.mxu1 %v232_v10 }
  0x27   : > { %999 = vmatprep.subr.mxu1 %v254_v3 }
  0x29   : > { %1012 = vmatmul.mubr.f32.vlgmr.msra.gmra.mrb[0].mxu0 %v242_v11 }
  0x2a   : > { %1015 = vmatpush3.msra.mxu0 %v167_v2  ;;  %1016 = vmatprep.mubr.f32.mxu0 %v232_v10 }
  0x2d   : > { %997 = vmatmul.mubr.f32.vlgmr.msra.gmra.mrb[0].mxu1 %v242_v11 }
  0x2e   : > { %1000 = vmatpush3.msra.mxu1 %v254_v3  ;;  %1001 = vmatprep.mubr.f32.mxu1 %v233_v13  ;;  %v1164_v3 = vmov 1326507024  }
  0x31   : > { %1017 = vmatmul.mubr.f32.vlgmr.msra.gmra.mrb[0].mxu0 %v242_v11 }
  0x35   : > { %1002 = vmatmul.mubr.f32.vlgmr.msra.gmra.mrb[0].mxu1 %v243_v14 }
 0x104   : > { %v1018_v21 = vpop.f32.mrb[0].mxu0 }
 0x105   : > { %v645_v22 = vpop.f32.mrb[1].mxu0 }
 0x108   : > { %v1003_v24 = vpop.f32.mrb[0].mxu1 }
 0x109   : > { %v1019_v25 = vadd.f32 %v1003_v24, %v956_v23  ;;  %v404_v26 = vpop.f32.mrb[1].mxu1 }
 0x10a   : > { %v1021_v27 = vadd.f32 %v956_v23, %v404_v26 }
 0x10b   : > { %v1242_v28 = vadd.f32 %v1019_v25, %v1018_v21 }
 0x10c   : > { %v1244_v29 = vadd.f32 %v1021_v27, %v645_v22 }
 0x10d   : > { %v759_v30 = vand.u32 2147483647, %v1242_v28  ;;  %v762_v31 = vand.u32 2139095040, %v1242_v28  ;;  %vm761_vm0 = vcmp.lt.s32.totalorder %v1242_v28, 0 }
 0x10e   : > { %v658_v32 = vand.u32 2139095040, %v1244_v29  ;;  %v655_v35 = vand.u32 2147483647, %v1244_v29 }
 0x10f   : > { %v763_v33 = vshrl.u32 %v762_v31, 23  ;;  %v766_v34 = vand.u32 8388607, %v759_v30  ;;  %vm1297_vm1 = vcmp.le.f32.partialorder %v759_v30, 0.7853982 }
 0x110   : > { %v659_v36 = vshrl.u32 %v658_v32, 23  ;;  %v1254_v41 = vand.u32 8388607, %v655_v35 }
 0x111   : > { %v961_v37 = vadd.s32 4294967169, %v763_v33  ;;  %v767_v40 = vor.u32 8388608, %v766_v34 }
 0x112   : > { %v957_v38 = vadd.s32 4294967169, %v659_v36  ;;  %v663_v48 = vor.u32 8388608, %v1254_v41 }
 0x113   : > { %v769_v39 = vadd.s32 1, %v961_v37  ;;  %v1256_v47 = vshll.u32 %v767_v40, 8 }
 0x114   : > { %v665_v42 = vadd.s32 1, %v957_v38 }
 0x115   : > { %vm770_vm2 = vcmp.gt.s32.totalorder %v769_v39, 0 }
 0x116   : > { %v771_v43 = vsel %vm770_vm2, %v769_v39, 0  ;;  %vm666_vm3 = vcmp.gt.s32.totalorder %v665_v42, 0 }
 0x117   : > { %v772_v44 = vshrl.u32 %v771_v43, 5  ;;  %v773_v45 = vand.u32 31, %v771_v43  ;;  %v667_v46 = vsel %vm666_vm3, %v665_v42, 0  ;;  %v703_v42 = vshll.u32 %v663_v48, 8 }
 0x118   : > { %v1259_v52 = vshrl.u32 %v667_v46, 5  ;;  %v669_v53 = vand.u32 31, %v667_v46  ;;  %vm657_vm3 = vcmp.lt.s32.totalorder %v1244_v29, 0 }
 0x119   : > { %v774_v49 = vsub.s32 32, %v773_v45  ;;  %v776_v51 = vshll.u32 %v1159_v50, %v773_v45  ;;  %v779_v55 = vshll.u32 %v1160_v54, %v773_v45  ;;  %v782_v57 = vshll.u32 %v1161_v56, %v773_v45 }
 0x11a   : > { %v785_v59 = vshll.u32 %v1162_v58, %v773_v45  ;;  %v788_v61 = vshll.u32 %v1163_v60, %v773_v45  ;;  %vm791_vm4 = vcmp.lt.s32.totalorder %v772_v44, 1  ;;  %vm792_vm5 = vcmp.lt.s32.totalorder %v772_v44, 2 }
 0x11b   : > { %v777_v62 = vshrl.u32 %v1160_v54, %v774_v49  ;;  %v780_v63 = vshrl.u32 %v1161_v56, %v774_v49  ;;  %v783_v0 = vshrl.u32 %v1162_v58, %v774_v49  ;;  %v775_v1 = vshrl.u32 %v1159_v50, %v774_v49 }
 0x11c   : > { %v786_v2 = vshrl.u32 %v1163_v60, %v774_v49  ;;  %v789_v4 = vshrl.u32 %v1164_v3, %v774_v49  ;;  %v670_v8 = vsub.s32 32, %v669_v53  ;;  %vm793_vm6 = vcmp.lt.s32.totalorder %v772_v44, 3 }
 0x11d   : > { %v778_v5 = vor.u32 %v777_v62, %v776_v51  ;;  %v781_v6 = vor.u32 %v780_v63, %v779_v55  ;;  %v784_v7 = vor.u32 %v783_v0, %v782_v57  ;;  %vm794_vm7 = vcmp.lt.s32.totalorder %v772_v44, 4 }
 0x11e   : > { %v787_v9 = vor.u32 %v786_v2, %v785_v59  ;;  %v790_v10 = vor.u32 %v789_v4, %v788_v61  ;;  %v672_v18 = vshll.u32 %v1159_v50, %v669_v53  ;;  %v673_v21 = vshrl.u32 %v1160_v54, %v670_v8 }
 0x11f   : > { %v795_v11 = vsel %vm791_vm4, %v775_v1, %v778_v5  ;;  %v796_v12 = vsel %vm794_vm7, %v784_v7, 2102212464  ;;  %v799_v13 = vsel %vm791_vm4, %v778_v5, %v781_v6  ;;  %v803_v14 = vsel %vm791_vm4, %v781_v6, %v784_v7 }
 0x120   : > { %v797_v15 = vsel %vm793_vm6, %v781_v6, %v796_v12  ;;  %v800_v16 = vsel %vm794_vm7, %v787_v9, 920167782  ;;  %v804_v17 = vsel %vm794_vm7, %v790_v10, 1326507024  ;;  %v675_v22 = vshll.u32 %v1160_v54, %v669_v53 }
 0x121   : > { %v801_v19 = vsel %vm793_vm6, %v784_v7, %v800_v16  ;;  %v805_v20 = vsel %vm793_vm6, %v787_v9, %v804_v17  ;;  %v798_v23 = vsel %vm792_vm5, %v795_v11, %v797_v15  ;;  %v676_v26 = vshrl.u32 %v1161_v56, %v670_v8 }
 0x122   : > { %v802_v24 = vsel %vm792_vm5, %v799_v13, %v801_v19  ;;  %v806_v25 = vsel %vm792_vm5, %v803_v14, %v805_v20  ;;  %v674_v34 = vor.u32 %v673_v21, %v672_v18  ;;  %v678_v37 = vshll.u32 %v1161_v56, %v669_v53 }
 0x123   : > { %v1268_v27 = vmul.u32.u64.low %v1256_v47, %v806_v25  ;;  %v1269_v31 = vmul.u32.u64.high %v1256_v47, %v806_v25, %v1268_v27  ;;  %v1272_v32 = vmul.u32.u64.low %v1256_v47, %v802_v24  ;;  %v1273_v33 = vmul.u32.u64.high %v1256_v47, %v802_v24, %v1272_v32 }
 0x124   : > { %v677_v36 = vor.u32 %v676_v26, %v675_v22  ;;  %v679_v38 = vshrl.u32 %v1162_v58, %v670_v8  ;;  %v681_v39 = vshll.u32 %v1162_v58, %v669_v53  ;;  %v682_v40 = vshrl.u32 %v1163_v60, %v670_v8 }
 0x125   : > { %v685_v41 = vshrl.u32 %v1164_v3, %v670_v8  ;;  %v814_v43 = vmul.u32 %v1256_v47, %v798_v23  ;;  %v671_v44 = vshrl.u32 %v1159_v50, %v670_v8  ;;  %v684_v46 = vshll.u32 %v1163_v60, %v669_v53 }
 0x126   : > { %v680_v45 = vor.u32 %v679_v38, %v678_v37  ;;  %vm816_vm8 = vc.u32 %v1269_v31, %v1272_v32  ;;  %v817_v49 = vadd.s32 1, %v1273_v33  ;;  %v683_v51 = vor.u32 %v682_v40, %v681_v39 }
 0x127   : > { %vm687_vm9 = vcmp.lt.s32.totalorder %v1259_v52, 1  ;;  %v686_v54 = vor.u32 %v685_v41, %v684_v46  ;;  %vm689_vm10 = vcmp.lt.s32.totalorder %v1259_v52, 3  ;;  %vm690_vm11 = vcmp.lt.s32.totalorder %v1259_v52, 4 }
 0x128   : > { %v695_v55 = vsel %vm687_vm9, %v674_v34, %v677_v36  ;;  %v818_v48 = vsel %vm816_vm8, %v817_v49, %v1273_v33  ;;  %v692_v56 = vsel %vm690_vm11, %v680_v45, 2102212464  ;;  %v696_v47 = vsel %vm690_vm11, %v683_v51, 920167782 }
 0x129   : > { %v699_v50 = vsel %vm687_vm9, %v677_v36, %v680_v45  ;;  %v819_v57 = vadd.s32 %v818_v48, %v814_v43  ;;  %vm688_vm12 = vcmp.lt.s32.totalorder %v1259_v52, 2  ;;  %v697_v53 = vsel %vm689_vm10, %v680_v45, %v696_v47 }
 0x12a   : > { %v700_v58 = vsel %vm690_vm11, %v686_v54, 1326507024  ;;  %v691_v59 = vsel %vm687_vm9, %v671_v44, %v674_v34  ;;  %v693_v60 = vsel %vm689_vm10, %v677_v36, %v692_v56  ;;  %v698_v61 = vsel %vm688_vm12, %v695_v55, %v697_v53 }
 0x12b   : > { %v701_v62 = vsel %vm689_vm10, %v683_v51, %v700_v58  ;;  %v820_v63 = vadd.s32 536870912, %v819_v57  ;;  %v1283_v1 = vmul.u32.u64.low %v703_v42, %v698_v61  ;;  %v1284_v2 = vmul.u32.u64.high %v703_v42, %v698_v61, %v1283_v1  ;;  %v147_v61 = vld [vmem:[%s1382_s1 + $0x5] sm:$0x1] }
 0x12c   : > { %v702_v0 = vsel %vm688_vm12, %v699_v50, %v701_v62  ;;  %v694_v6 = vsel %vm688_vm12, %v691_v59, %v693_v60  ;;  %v815_v22 = vadd.s32 %v1272_v32, %v1269_v31  ;;  %vm148_vm2 = vcmp.ne.f32.partialorder %v147_v61, 0.0 }
 0x12d   : > { %v1286_v3 = vmul.u32.u64.low %v703_v42, %v702_v0  ;;  %v1287_v4 = vmul.u32.u64.high %v703_v42, %v702_v0, %v1286_v3  ;;  %v821_v5 = vshrl.u32 %v820_v63, 30  ;;  %v713_v8 = vadd.s32 1, %v1284_v2 }
 0x12e   : > { %v710_v52 = vmul.u32 %v703_v42, %v694_v6  ;;  %vm1312_vm4 = vcmp.le.f32.partialorder %v655_v35, 0.7853982  ;;  %vm851_vm9 = vweird.f32 %v1242_v28 }
 0x12f   : > { %v822_v7 = vshll.u32 %v821_v5, 30  ;;  %vm712_vm13 = vc.u32 %v1287_v4, %v1283_v1  ;;  %v711_v43 = vadd.s32 %v1283_v1, %v1287_v4  ;;  %v845_v32 = vsub.s32 4, %v821_v5 }
 0x130   : > { %v714_v10 = vsel %vm712_vm13, %v713_v8, %v1284_v2  ;;  %vm747_vm13 = vweird.f32 %v1244_v29 }
 0x131   : > { %v823_v9 = vsub.s32 %v819_v57, %v822_v7  ;;  %v715_v11 = vadd.s32 %v714_v10, %v710_v52  ;;  %v846_v50 = vsel %vm761_vm0, %v845_v32, %v821_v5  ;;  %v864_v57 = vlaneseq }
 0x132   : > { %v848_v30 = vsel %vm1297_vm1, 0, %v846_v50  ;;  %v1165_v7 = vmov 0  }
 0x133   : > { %v825_v12 = vsub.s32 0, %v823_v9  ;;  %v716_v13 = vadd.s32 536870912, %v715_v11  ;;  %v865_v62 = vshrl.u32 %v864_v57, 7  ;;  %v852_v1 = vadd.s32 3, %v848_v30 }
 0x134   : > { %v863_v8 = vsel %vm148_vm2, 1, %v1165_v7 }
 0x135   : > { %v962_v14 = vmin.u32 %v825_v12, %v823_v9  ;;  %v717_v15 = vshrl.u32 %v716_v13, 30  ;;  %v866_v3 = vsub.s32 0, %v865_v62 }
 0x137   : > { %v827_v16 = vclz %v962_v14  ;;  %v718_v17 = vshll.u32 %v717_v15, 30  ;;  %v741_v0 = vsub.s32 4, %v717_v15  ;;  %v867_v35 = vrot.slane %v863_v8, %v866_v3 }
 0x139   : > { %v963_v18 = vadd.s32 4294967294, %v827_v16  ;;  %v719_v19 = vsub.s32 %v715_v11, %v718_v17  ;;  %v742_v6 = vsel %vm657_vm3, %v741_v0, %v717_v15  ;;  %vm868_vm8 = vcmp.eq.s32.totalorder %v867_v35, 1 }
 0x13a   : > { %v744_v11 = vsel %vm1312_vm4, 0, %v742_v6 }
 0x13b   : > { %vm964_vm14 = vcmp.lt.s32.totalorder %v963_v18, 0  ;;  %v721_v21 = vsub.s32 0, %v719_v19  ;;  %v748_v15 = vadd.s32 3, %v744_v11 }
 0x13c   : > { %v830_v20 = vsel %vm964_vm14, 0, %v963_v18 }
 0x13d   : > { %v831_v23 = vsub.s32 32, %v830_v20  ;;  %v835_v24 = vsub.s32 4294967266, %v830_v20  ;;  %v958_v25 = vmin.u32 %v721_v21, %v719_v19  ;;  %v832_v26 = vshll.u32 %v823_v9, %v830_v20 }
 0x13e   : > { %v853_v9 = vand.u32 3, %v852_v1  ;;  %v749_v20 = vand.u32 3, %v748_v15 }
 0x13f   : > { %v833_v27 = vshrl.u32 %v815_v22, %v831_v23  ;;  %v836_v33 = vadd.s32 127, %v835_v24  ;;  %v723_v34 = vclz %v958_v25 }
 0x140   : > { %vm858_vm5 = vcmp.eq.s32.totalorder %v853_v9, 2  ;;  %vm855_vm6 = vcmp.eq.s32.totalorder %v853_v9, 0  ;;  %vm854_vm7 = vcmp.lt.s32.totalorder %v853_v9, 2  ;;  %vm754_vm10 = vcmp.eq.s32.totalorder %v749_v20, 2 }
 0x141   : > { %v834_v36 = vor.u32 %v833_v27, %v832_v26  ;;  %v837_v37 = vshll.u32 %v836_v33, 23  ;;  %v959_v38 = vadd.s32 4294967294, %v723_v34  ;;  %vm751_vm11 = vcmp.eq.s32.totalorder %v749_v20, 0 }
 0x142   : > { %vm750_vm12 = vcmp.lt.s32.totalorder %v749_v20, 2 }
 0x143   : > { %v838_v39 = vor.u32 4788187, %v837_v37  ;;  %vm960_vm15 = vcmp.lt.s32.totalorder %v959_v38, 0  ;;  %v841_v41 = vcvt.s32.f32 %v834_v36 }
 0x144   : > { %v726_v42 = vsel %vm960_vm15, 0, %v959_v38 }
 0x145   : > { %v839_v40 = vand.u32 2147483647, %v838_v39  ;;  %v727_v44 = vsub.s32 32, %v726_v42  ;;  %v731_v45 = vsub.s32 4294967266, %v726_v42  ;;  %v728_v46 = vshll.u32 %v719_v19, %v726_v42 }
 0x147   : > { %v842_v31 = vmul.f32 %v841_v41, %v839_v40  ;;  %v729_v49 = vshrl.u32 %v711_v43, %v727_v44  ;;  %v732_v51 = vadd.s32 127, %v731_v45 }
 0x149   : > { %v843_v54 = vxor.u32 2147483648, %v842_v31  ;;  %v730_v55 = vor.u32 %v729_v49, %v728_v46  ;;  %v733_v48 = vshll.u32 %v732_v51, 23 }
 0x14b   : > { %v844_v47 = vsel %vm761_vm0, %v843_v54, %v842_v31  ;;  %v734_v58 = vor.u32 4788187, %v733_v48  ;;  %v737_v60 = vcvt.s32.f32 %v730_v55 }
 0x14c   : > { %v847_v53 = vsel %vm1297_vm1, %v1242_v28, %v844_v47 }
 0x14d   : > { %1087 = vcosq.f32 %v847_v53  ;;  %v735_v59 = vand.u32 2147483647, %v734_v58 }
 0x14e   : > { %1089 = vsinq.f32 %v847_v53 }
 0x14f   : > { %v738_v63 = vmul.f32 %v737_v60, %v735_v59 }
 0x151   : > { %v739_v2 = vxor.u32 2147483648, %v738_v63 }
 0x153   : > { %v740_v5 = vsel %vm657_vm3, %v739_v2, %v738_v63 }
 0x154   : > { %v743_v52 = vsel %vm1312_vm4, %v1244_v29, %v740_v5 }
 0x155   : > { %1091 = vcosq.f32 %v743_v52 }
 0x156   : > { %1093 = vsinq.f32 %v743_v52 }
 0x157   : > { %v1088_v10 = vpop.eup %1087 }
 0x158   : > { %v1090_v12 = vpop.eup %1089  ;;  %v859_v13 = vxor.u32 2147483648, %v1088_v10 }
 0x159   : > { %v856_v14 = vxor.u32 2147483648, %v1090_v12 }
 0x15a   : > { %v860_v16 = vsel %vm858_vm5, %v859_v13, %v1090_v12 }
 0x15b   : > { %v857_v17 = vsel %vm855_vm6, %v1088_v10, %v856_v14 }
 0x15c   : > { %v861_v18 = vsel %vm854_vm7, %v857_v17, %v860_v16 }
 0x15d   : > { %v862_v19 = vsel %vm851_vm9, nan, %v861_v18 }
 0x15e   : > { %v870_v21 = vsel %vm868_vm8, %v862_v19, %v1242_v28 }
 0x15f   : > { %872 = vst [vmem:[%s137_s6 + $0x8] sm:$0xff] %v870_v21  ;;  %v1092_v22 = vpop.eup %1091 }
 0x160   : > { %v1094_v23 = vpop.eup %1093  ;;  %v755_v24 = vxor.u32 2147483648, %v1092_v22 }
 0x161   : > { %v752_v25 = vxor.u32 2147483648, %v1094_v23 }
 0x162   : > { %v756_v26 = vsel %vm754_vm10, %v755_v24, %v1094_v23 }
 0x163   : > { %v753_v27 = vsel %vm751_vm11, %v1092_v22, %v752_v25 }
 0x164   : > { %v757_v33 = vsel %vm750_vm12, %v753_v27, %v756_v26 }
 0x165   : > { %v758_v28 = vsel %vm747_vm13, nan, %v757_v33 }
 0x166   : > { %v869_v34 = vsel %vm868_vm8, %v758_v28, %v1244_v29 }
 0x167   : > { %871 = vst [vmem:[%s137_s6] sm:$0xff] %v869_v34 }
 0x168   : > { %1108 = shalt.err (!%p1105_p3)
}
 0x169   : > { %s1109_s25 = scalar_lea.hbm %s1332_s17, 256  ;;  %s1113_s28 = scalar_lea.hbm %s1383_s2, 512 }
 0x16a   : > { %p1110_p4 = scmp.ne.s32.totalorder %s1332_s17, %s1109_s25  ;;  %p1114_p9 = scmp.lt.u32.totalorder %s1332_s17, %s1383_s2 }
 0x16b   : > { %p1115_p10 = scmp.lt.u32.totalorder %s1113_s28, %s1109_s25  ;;  %p1117_p12 = scmp.lt.u32.totalorder %s1109_s25, %s1332_s17 }
 0x16c   : > { %p1111_p7 = pnand %p1110_p4, %p1222_p5 }
 0x16d   : > { %p1116_p11 = por %p1115_p10, %p1114_p9 }
 0x16e   : > { %p1112_p8 = pneg %p1111_p7 }
 0x16f   : > { %p1118_p13 = por %p1117_p12, %p1116_p11 }
 0x171   : > { %p1119_p0 = pnand %p1118_p13, %p1112_p8 }
 0x173   : > { %1122 = shalt.err (!%p1119_p0)
}
 0x174   : > { %s1167_s3 = smov 128   ;;  %s1168_s4 = smov 8  }
 0x175   : > { %1039 = dma.vmem_to_hbm [thread:$0]  (%p1222_p5), %s1334_s8, 256, %s1332_s17, %s1340_s13, %s1167_s3, %s1167_s3, %s1168_s4  }
 0x176 PF: > { %p1045_p1 = scmp.ge.s32.totalorder %s1157_s12, 2  ;;  %s902_s5 = sand.u32 1, %s1145_s9  }
 0x177   : > { %s903_s6 = scalar_lea.sflag [#allocation3], %s902_s5 }
 0x178   : > { %p1042_p2 = pnand %p1045_p1, %p1226_p6 }
 0x17a   : > { %1140 = dma.done.wait (!%p1042_p2), %s903_s6, 256  }
 0x17b   : > { %1142 = vsyncadd (!%p1042_p2), %s903_s6, 4294967040  ;;  %p12_p3 = scmp.ge.s32.totalorder %s1209_s15, 4   ;;  %s1390_s9 = smov %s1149_s10 }
 0x17c   : > { %s1391_s10 = smov %s1153_s11  ;;  %s1392_s11 = smov %s1220_s18 }
 0x17d   : > { %s1393_s12 = smov %s1209_s15  ;;  %14 = sbr.rel (!%p12_p3) target bundleno = 3 (0x3), region = 63 }
 0x184   :  { %908 = vsyncpa [#allocation3], 1 }
 0x185   :  { %910 = vsyncpa [#allocation3 + $0x1], 1 }

</bundles_post_ra>
